<compile_context>
chip_gen: v7x
topology: tpu7x:2x2x1
jax: 0.10.0
libtpu: 0.0.40
codegen_flags: <defaults>
</compile_context>

<pallas_src>
from functools import partial

import numpy as np
import jax
import jax.numpy as jnp
from jax.experimental import pallas as pl
from jax.experimental.pallas import tpu as pltpu


# -------------------- hardware-aware sizing helpers --------------------

def _vmem_limit_bytes(frac=0.75, fallback_cap=64 * 1024 * 1024):
    """Scoped-VMEM limit derived from the physical VMEM of this generation."""
    cap = fallback_cap                      # conservative (v7x has 64 MiB / TC)
    try:
        info = pltpu.get_tpu_info()
        for name in ("vmem_capacity_bytes", "vmem_size_bytes", "vmem_bytes"):
            v = getattr(info, name, None)
            if v:
                cap = int(v)
                break
    except Exception:
        pass
    return int(cap * frac)


def _pick_tile_h(H, W, target_rows):
    """Largest TH dividing H such that the (out_c, TH*W) output tile is
    lane-aligned (TH*W % 128 == 0, or TH == H) and TH*W <= target_rows."""
    divisors = [d for d in range(1, H + 1) if H % d == 0]
    ok = [d for d in divisors if (d * W) % 128 == 0 or d == H]
    fit = [d for d in ok if d * W <= target_rows]
    return max(fit) if fit else min(ok)


def _pick_channel_block(Cout, H, W, budget_bytes):
    """Largest CB dividing Cout so kernel 2's double-buffered in/out blocks fit."""
    per_c = 64 * H * W                       # in + 4x out (f32, 2x buffered) + temps
    cb_max = max(1, budget_bytes // max(per_c, 1))
    fit = [d for d in range(1, Cout + 1) if Cout % d == 0 and d <= cb_max]
    return max(fit) if fit else 1


# -------------------- Pallas kernels --------------------

def conv_res_kernel(x_ref, w3_ref, wpw_ref, wpw2_ref, wpws_ref, bias_ref, out_ref,
                    *, TH, W, Cin, mid_c, in_c, out_c):
    """OnePathResUnit on one (TH x W) row tile of one image.

    x_ref   : (1, H+2, W+2, Cin) bf16  -- zero-padded NHWC image, VMEM-resident
    w3_ref  : (9*Cin, 2*mid)     bf16  -- [grouped-3x3 main | grouped-3x3 shortcut]
    wpw_ref : (mid, in_c)        bf16  -- main 1x1 #1
    wpw2_ref: (in_c, out_c)      bf16  -- main 1x1 #2 (linear)
    wpws_ref: (mid, out_c)       bf16  -- shortcut 1x1
    bias_ref: (4, L)             f32   -- packed folded-BN biases
    out_ref : (1, out_c, TH*W)   f32   -- channels-first, lane-dense tile
    """
    t = pl.program_id(1)
    row0 = t * TH
    if TH % 8 == 0:
        row0 = pl.multiple_of(row0, 8)

    # (TH+2, W+2, Cin) slab including the 1-pixel zero halo.
    slab = x_ref[0, pl.ds(row0, TH + 2), :, :]
    # In-VMEM im2col: 9 shifted views -> (TH*W, 9*Cin) bf16 patch tile.
    cols = [slab[dy:dy + TH, dx:dx + W, :] for dy in range(3) for dx in range(3)]
    p = jnp.concatenate(cols, axis=-1).reshape(TH * W, 9 * Cin)

    dot = partial(jnp.dot, preferred_element_type=jnp.float32)
    b = bias_ref[...]                                        # (4, L) f32

    # Fused grouped-3x3 for main + shortcut: one MXU matmul, K = 9*Cin.
    z = dot(p, w3_ref[...])                                  # (TH*W, 2*mid) f32
    zm = z[:, :mid_c] + b[0:1, :mid_c]                       # main    (+BN bias)
    zs = z[:, mid_c:] + b[0:1, mid_c:2 * mid_c]              # shortcut(+BN bias)

    # Main path: ReLU -> 1x1 -> ReLU -> 1x1 (linear_out=True -> no final act).
    a = jnp.maximum(zm, 0.0).astype(jnp.bfloat16)
    a = dot(a, wpw_ref[...]) + b[1:2, :in_c]
    a = jnp.maximum(a, 0.0).astype(jnp.bfloat16)
    main = dot(a, wpw2_ref[...]) + b[2:3, :out_c]

    # Shortcut path: 1x1, no activation.
    short = dot(zs.astype(jnp.bfloat16), wpws_ref[...]) + b[3:4, :out_c]

    # Residual add (no ReLU).  Store channels-first so TH*W sits on the lane
    # axis -> unmasked, lane-dense stores; XLU transpose rides a free slot.
    out_ref[0] = (main + short).T                            # (out_c, TH*W)


def upsample2x_kernel(x_ref, uxt_ref, o_ref, *, CB, H, W):
    """Bilinear x2 (align_corners=False) on a (CB, H, W) channel block.

    Rows (sublane axis): exact 2-tap VPU blends with edge clamping.
    Cols (lane axis)   : one MXU matmul against the exact (W, 2W) interp matrix.
    """
    x = x_ref[0]                                             # (CB, H, W) f32
    x_prev = jnp.concatenate([x[:, :1, :], x[:, :-1, :]], axis=1)   # x[i-1] clamped
    x_next = jnp.concatenate([x[:, 1:, :], x[:, -1:, :]], axis=1)   # x[i+1] clamped
    even_r = 0.75 * x + 0.25 * x_prev        # out row 2i   = .25*x[i-1] + .75*x[i]
    odd_r = 0.75 * x + 0.25 * x_next         # out row 2i+1 = .75*x[i]   + .25*x[i+1]
    y = jnp.stack([even_r, odd_r], axis=2).reshape(CB, 2 * H, W)

    y2 = jnp.dot(y.reshape(CB * 2 * H, W), uxt_ref[...],
                 preferred_element_type=jnp.float32)         # (CB*2H, 2W)
    o_ref[0] = y2.reshape(CB, 2 * H, 2 * W)


# -------------------- parameter setup (glue) --------------------

def _grouped_dense_w(key, cin, cout, groups, scale=0.2):
    """Dense (3,3,cin,cout) weight with block-diagonal group structure."""
    cin_g, cout_g = cin // groups, cout // groups
    wg = scale * jax.random.normal(key, (groups, 3, 3, cin_g, cout_g), jnp.float32)
    Wt = jnp.zeros((3, 3, cin, cout), jnp.float32)
    for g in range(groups):
        Wt = Wt.at[:, :, g * cin_g:(g + 1) * cin_g,
                         g * cout_g:(g + 1) * cout_g].set(wg[g])
    return Wt


def _fold_bn(Wt, b, key, c, eps=1e-5):
    """Fold a deterministic eval-mode BatchNorm into conv weight/bias (exact)."""
    k1, k2, k3, k4 = jax.random.split(key, 4)
    gamma = 1.0 + 0.1 * jax.random.normal(k1, (c,), jnp.float32)
    beta = 0.1 * jax.random.normal(k2, (c,), jnp.float32)
    mean = 0.1 * jax.random.normal(k3, (c,), jnp.float32)
    var = 1.0 + 0.1 * jax.random.uniform(k4, (c,), jnp.float32)
    s = gamma / jnp.sqrt(var + eps)
    return Wt * s, (b - mean) * s + beta


def make_params(key, in_c, out_c, group_base, factor=2.0, eps=1e-5):
    """Random folded-BN f32 parameters (reference layout, un-fused)."""
    mid_c = int(in_c * factor)
    groups = in_c // group_base
    ks = jax.random.split(key, 16)

    wdw = _grouped_dense_w(ks[0], in_c, mid_c, groups)
    bdw = 0.05 * jax.random.normal(ks[1], (mid_c,), jnp.float32)
    wdw, bdw = _fold_bn(wdw, bdw, ks[2], mid_c, eps)
    wdw = wdw.reshape(9 * in_c, mid_c)

    wpw = 0.2 * jax.random.normal(ks[3], (mid_c, in_c), jnp.float32)
    bpw = 0.05 * jax.random.normal(ks[4], (in_c,), jnp.float32)
    wpw, bpw = _fold_bn(wpw, bpw, ks[5], in_c, eps)

    wpw2 = 0.2 * jax.random.normal(ks[6], (in_c, out_c), jnp.float32)
    bpw2 = 0.05 * jax.random.normal(ks[7], (out_c,), jnp.float32)
    wpw2, bpw2 = _fold_bn(wpw2, bpw2, ks[8], out_c, eps)

    wdws = _grouped_dense_w(ks[9], in_c, mid_c, groups)
    bdws = 0.05 * jax.random.normal(ks[10], (mid_c,), jnp.float32)
    wdws, bdws = _fold_bn(wdws, bdws, ks[11], mid_c, eps)
    wdws = wdws.reshape(9 * in_c, mid_c)

    wpws = 0.2 * jax.random.normal(ks[12], (mid_c, out_c), jnp.float32)
    bpws = 0.05 * jax.random.normal(ks[13], (out_c,), jnp.float32)
    wpws, bpws = _fold_bn(wpws, bpws, ks[14], out_c, eps)

    return dict(wdw=wdw, bdw=bdw, wpw=wpw, bpw=bpw, wpw2=wpw2, bpw2=bpw2,
                wdws=wdws, bdws=bdws, wpws=wpws, bpws=bpws)


def pack_params(rp):
    """Pack reference params for the kernel: fused bf16 weights + one f32 bias array."""
    mid_c = rp["wdw"].shape[1]
    in_c = rp["wpw"].shape[1]
    out_c = rp["wpw2"].shape[1]
    w3 = jnp.concatenate([rp["wdw"], rp["wdws"]], axis=1).astype(jnp.bfloat16)
    L = max(2 * mid_c, in_c, out_c)
    bias = jnp.zeros((4, L), jnp.float32)
    bias = bias.at[0, :mid_c].set(rp["bdw"])
    bias = bias.at[0, mid_c:2 * mid_c].set(rp["bdws"])
    bias = bias.at[1, :in_c].set(rp["bpw"])
    bias = bias.at[2, :out_c].set(rp["bpw2"])
    bias = bias.at[3, :out_c].set(rp["bpws"])
    return dict(w3=w3,
                wpw=rp["wpw"].astype(jnp.bfloat16),
                wpw2=rp["wpw2"].astype(jnp.bfloat16),
                wpws=rp["wpws"].astype(jnp.bfloat16),
                bias=bias)


def bilinear_matrix(n_in, scale=2):
    """PyTorch bilinear (align_corners=False) interpolation matrix (n_out, n_in)."""
    n_out = int(np.floor(n_in * scale))
    s = n_in / n_out
    dst = np.arange(n_out, dtype=np.float64)
    src = np.maximum((dst + 0.5) * s - 0.5, 0.0)
    i0 = np.clip(np.floor(src).astype(np.int64), 0, n_in - 1)
    lam = src - i0
    i1 = np.minimum(i0 + 1, n_in - 1)
    U = np.zeros((n_out, n_in), np.float32)
    U[np.arange(n_out), i0] += (1.0 - lam)
    U[np.arange(n_out), i1] += lam
    return U


# -------------------- forward (Pallas) --------------------

def upscale_forward(x_nchw, params, tile_rows=None):
    N, Cin, H, W = x_nchw.shape
    w3, wpw, wpw2, wpws, bias = (params["w3"], params["wpw"], params["wpw2"],
                                 params["wpws"], params["bias"])
    mid_c = w3.shape[1] // 2
    in_c = wpw.shape[1]
    out_c = wpw2.shape[1]
    assert w3.shape[0] == 9 * Cin

    vmem_limit = _vmem_limit_bytes()

    # NHWC + 1-pixel zero halo, bf16 (replaces the 9x im2col blow-up in HBM).
    x_pad = jnp.pad(jnp.transpose(x_nchw, (0, 2, 3, 1)),
                    ((0, 0), (1, 1), (1, 1), (0, 0))).astype(jnp.bfloat16)

    if tile_rows is None:
        bytes_per_row = (9 * Cin * 2                 # bf16 patch tile
                         + 2 * mid_c * 4             # fused grouped-conv result
                         + (mid_c + in_c + out_c) * 4
                         + out_c * 4 * 2)            # double-buffered output tile
        tile_rows = max(128, min(2048, (vmem_limit // 4) // max(bytes_per_row, 1)))
    TH = _pick_tile_h(H, W, tile_rows)
    n_tiles = H // TH

    const2 = lambda i, j: (0, 0)

    # ---- kernel 1: OnePathResUnit (grouped 3x3 + 1x1 convs + BN + ReLU + residual)
    kern1 = partial(conv_res_kernel, TH=TH, W=W, Cin=Cin,
                    mid_c=mid_c, in_c=in_c, out_c=out_c)
    mid = pl.pallas_call(
        kern1,
        out_shape=jax.ShapeDtypeStruct((N, out_c, H * W), jnp.float32),
        grid=(N, n_tiles),
        in_specs=[
            pl.BlockSpec((1, H + 2, W + 2, Cin), lambda n, t: (n, 0, 0, 0)),
            pl.BlockSpec(w3.shape, const2),
            pl.BlockSpec(wpw.shape, const2),
            pl.BlockSpec(wpw2.shape, const2),
            pl.BlockSpec(wpws.shape, const2),
            pl.BlockSpec(bias.shape, const2),
        ],
        out_specs=pl.BlockSpec((1, out_c, TH * W), lambda n, t: (n, 0, t)),
        compiler_params=pltpu.CompilerParams(
            dimension_semantics=("parallel", "parallel"),
            vmem_limit_bytes=vmem_limit),
    )(x_pad, w3, wpw, wpw2, wpws, bias)

    # Free metadata reshape to NCHW — no HBM transpose between the two kernels.
    mid = mid.reshape(N, out_c, H, W)

    # ---- kernel 2: bilinear x2 upsample (align_corners=False), channel-batched
    uxt = jnp.asarray(bilinear_matrix(W, 2)).T               # (W, 2W) f32
    CB = _pick_channel_block(out_c, H, W, vmem_limit // 3)
    kern2 = partial(upsample2x_kernel, CB=CB, H=H, W=W)
    out = pl.pallas_call(
        kern2,
        out_shape=jax.ShapeDtypeStruct((N, out_c, 2 * H, 2 * W), jnp.float32),
        grid=(N, out_c // CB),
        in_specs=[
            pl.BlockSpec((1, CB, H, W), lambda n, c: (n, c, 0, 0)),
            pl.BlockSpec(uxt.shape, const2),
        ],
        out_specs=pl.BlockSpec((1, CB, 2 * H, 2 * W), lambda n, c: (n, c, 0, 0)),
        compiler_params=pltpu.CompilerParams(
            dimension_semantics=("parallel", "parallel"),
            vmem_limit_bytes=vmem_limit),
    )(mid, uxt)
    return out


# -------------------- pure-JAX reference --------------------

def im2col_3x3(x_nhwc):
    """Zero-padded 3x3 stride-1 patches -> (N, H*W, 9*C).  Reference only."""
    N, H, W, C = x_nhwc.shape
    xp = jnp.pad(x_nhwc, ((0, 0), (1, 1), (1, 1), (0, 0)))
    cols = [xp[:, dy:dy + H, dx:dx + W, :] for dy in range(3) for dx in range(3)]
    return jnp.stack(cols, axis=3).reshape(N, H * W, 9 * C)


def reference_forward(x_nchw, rp):
    """Structure matches the PyTorch module (folded eval-mode BN, residual without
    final ReLU, bilinear x2 align_corners=False).  Matmul inputs are cast to bf16
    at the same points as the kernel so the comparison tolerance stays tight."""
    N, Cin, H, W = x_nchw.shape
    bf = jnp.bfloat16
    dot = partial(jnp.dot, preferred_element_type=jnp.float32)

    p = im2col_3x3(jnp.transpose(x_nchw, (0, 2, 3, 1)).astype(bf))   # (N, HW, 9Cin)
    t = jnp.maximum(dot(p, rp["wdw"].astype(bf)) + rp["bdw"], 0.0).astype(bf)
    t = jnp.maximum(dot(t, rp["wpw"].astype(bf)) + rp["bpw"], 0.0).astype(bf)
    main = dot(t, rp["wpw2"].astype(bf)) + rp["bpw2"]
    s = dot(p, rp["wdws"].astype(bf)) + rp["bdws"]
    s = dot(s.astype(bf), rp["wpws"].astype(bf)) + rp["bpws"]
    mid = (main + s).reshape(N, H, W, -1).transpose(0, 3, 1, 2)

    Uy = jnp.asarray(bilinear_matrix(H, 2))
    Ux = jnp.asarray(bilinear_matrix(W, 2))
    return jnp.einsum("yh,nchw,xw->ncyx", Uy, mid, Ux)


# -------------------- main --------------------

if __name__ == "__main__":
    N, in_c, out_c = 2, 4, 8
    H = W = 16
    gc_group_base = 2
    factor = 2.0

    key = jax.random.PRNGKey(0)
    kx, kp = jax.random.split(key)
    x = jax.random.normal(kx, (N, in_c, H, W), jnp.float32)   # NCHW, like PyTorch
    ref_params = make_params(kp, in_c, out_c, gc_group_base, factor)
    kernel_params = pack_params(ref_params)

    # tile_rows=128 forces 2 row tiles per image at this toy size so the halo /
    # lane-dense output path is exercised; production sizes auto-derive from VMEM.
    out = jax.block_until_ready(upscale_forward(x, kernel_params, tile_rows=128))

    assert out.shape == (N, out_c, 2 * H, 2 * W), out.shape
    assert bool(jnp.all(jnp.isfinite(out)))

    ref = jax.block_until_ready(reference_forward(x, ref_params))
    # Tolerance sized for bf16 MXU inputs (mirrored in the reference), f32 accum.
    np.testing.assert_allclose(np.asarray(out, np.float32),
                               np.asarray(ref, np.float32),
                               rtol=1e-2, atol=1e-2)

    print("KERNEL_OK")
</pallas_src>

<mosaic_0001>
module attributes {stable_mosaic.version = 11 : i64} {
  func.func @conv_res_kernel(%arg0: i32, %arg1: i32, %arg2: memref<1x18x18x4xbf16, #tpu.memory_space<vmem>>, %arg3: memref<36x16xbf16, #tpu.memory_space<vmem>>, %arg4: memref<8x4xbf16, #tpu.memory_space<vmem>>, %arg5: memref<4x8xbf16, #tpu.memory_space<vmem>>, %arg6: memref<8x8xbf16, #tpu.memory_space<vmem>>, %arg7: memref<4x16xf32, #tpu.memory_space<vmem>>, %arg8: memref<1x8x128xf32, #tpu.memory_space<vmem>>) attributes {dimension_semantics = [#tpu.dimension_semantics<parallel>, #tpu.dimension_semantics<parallel>], iteration_bounds = array<i64: 2, 2>, scalar_prefetch = 0 : i64, scratch_operands = 0 : i64, tpu.core_type = #tpu.core_type<tc>, window_params = [{transform_indices = @transform_0, window_bounds = array<i64: 1, 18, 18, 4>}, {pipeline_mode = #tpu.pipeline_mode<synchronous>, transform_indices = @transform_1, window_bounds = array<i64: 36, 16>}, {pipeline_mode = #tpu.pipeline_mode<synchronous>, transform_indices = @transform_2, window_bounds = array<i64: 8, 4>}, {pipeline_mode = #tpu.pipeline_mode<synchronous>, transform_indices = @transform_3, window_bounds = array<i64: 4, 8>}, {pipeline_mode = #tpu.pipeline_mode<synchronous>, transform_indices = @transform_4, window_bounds = array<i64: 8, 8>}, {pipeline_mode = #tpu.pipeline_mode<synchronous>, transform_indices = @transform_5, window_bounds = array<i64: 4, 16>}, {transform_indices = @transform_6, window_bounds = array<i64: 1, 8, 128>}]} {
    %c8_i32 = arith.constant 8 : i32
    %0 = arith.muli %arg1, %c8_i32 : i32
    %1 = tpu.assume_multiple %0, 8 : i32
    %c0 = arith.constant 0 : index
    %2 = arith.index_cast %1 : i32 to index
    %c0_0 = arith.constant 0 : index
    %c0_1 = arith.constant 0 : index
    %3 = vector.load %arg2[%c0, %2, %c0_0, %c0_1] : memref<1x18x18x4xbf16, #tpu.memory_space<vmem>>, vector<1x10x18x4xbf16>
    %4 = vector.shape_cast %3 : vector<1x10x18x4xbf16> to vector<10x18x4xbf16>
    %5 = vector.extract_strided_slice %4 {offsets = [0, 0, 0], sizes = [8, 16, 4], strides = [1, 1, 1]} : vector<10x18x4xbf16> to vector<8x16x4xbf16>
    %6 = vector.extract_strided_slice %4 {offsets = [0, 1, 0], sizes = [8, 16, 4], strides = [1, 1, 1]} : vector<10x18x4xbf16> to vector<8x16x4xbf16>
    %7 = vector.extract_strided_slice %4 {offsets = [0, 2, 0], sizes = [8, 16, 4], strides = [1, 1, 1]} : vector<10x18x4xbf16> to vector<8x16x4xbf16>
    %8 = vector.extract_strided_slice %4 {offsets = [1, 0, 0], sizes = [8, 16, 4], strides = [1, 1, 1]} : vector<10x18x4xbf16> to vector<8x16x4xbf16>
    %9 = vector.extract_strided_slice %4 {offsets = [1, 1, 0], sizes = [8, 16, 4], strides = [1, 1, 1]} : vector<10x18x4xbf16> to vector<8x16x4xbf16>
    %10 = vector.extract_strided_slice %4 {offsets = [1, 2, 0], sizes = [8, 16, 4], strides = [1, 1, 1]} : vector<10x18x4xbf16> to vector<8x16x4xbf16>
    %11 = vector.extract_strided_slice %4 {offsets = [2, 0, 0], sizes = [8, 16, 4], strides = [1, 1, 1]} : vector<10x18x4xbf16> to vector<8x16x4xbf16>
    %12 = vector.extract_strided_slice %4 {offsets = [2, 1, 0], sizes = [8, 16, 4], strides = [1, 1, 1]} : vector<10x18x4xbf16> to vector<8x16x4xbf16>
    %13 = vector.extract_strided_slice %4 {offsets = [2, 2, 0], sizes = [8, 16, 4], strides = [1, 1, 1]} : vector<10x18x4xbf16> to vector<8x16x4xbf16>
    %14 = tpu.concatenate %5, %6, %7, %8, %9, %10, %11, %12, %13 in 2 : vector<8x16x4xbf16>, vector<8x16x4xbf16>, vector<8x16x4xbf16>, vector<8x16x4xbf16>, vector<8x16x4xbf16>, vector<8x16x4xbf16>, vector<8x16x4xbf16>, vector<8x16x4xbf16>, vector<8x16x4xbf16> -> vector<8x16x36xbf16>
    %15 = vector.shape_cast %14 : vector<8x16x36xbf16> to vector<128x36xbf16>
    %c0_2 = arith.constant 0 : index
    %c0_3 = arith.constant 0 : index
    %16 = vector.load %arg7[%c0_2, %c0_3] : memref<4x16xf32, #tpu.memory_space<vmem>>, vector<4x16xf32>
    %c0_4 = arith.constant 0 : index
    %c0_5 = arith.constant 0 : index
    %17 = vector.load %arg3[%c0_4, %c0_5] : memref<36x16xbf16, #tpu.memory_space<vmem>>, vector<36x16xbf16>
    %cst = arith.constant dense<0.000000e+00> : vector<128x16xf32>
    %18 = tpu.matmul %15, %17, %cst {dimension_numbers = #tpu.dot_dimension_numbers<[1], [0], [0], [1], [0, 0, 1, 1], [], []>} : vector<128x36xbf16>, vector<36x16xbf16>, vector<128x16xf32> -> vector<128x16xf32>
    %19 = vector.extract_strided_slice %18 {offsets = [0, 0], sizes = [128, 8], strides = [1, 1]} : vector<128x16xf32> to vector<128x8xf32>
    %20 = vector.extract_strided_slice %16 {offsets = [0, 0], sizes = [1, 8], strides = [1, 1]} : vector<4x16xf32> to vector<1x8xf32>
    %21 = vector.broadcast %20 : vector<1x8xf32> to vector<128x8xf32>
    %22 = arith.addf %19, %21 : vector<128x8xf32>
    %23 = vector.extract_strided_slice %18 {offsets = [0, 8], sizes = [128, 8], strides = [1, 1]} : vector<128x16xf32> to vector<128x8xf32>
    %24 = vector.extract_strided_slice %16 {offsets = [0, 8], sizes = [1, 8], strides = [1, 1]} : vector<4x16xf32> to vector<1x8xf32>
    %25 = vector.broadcast %24 : vector<1x8xf32> to vector<128x8xf32>
    %26 = arith.addf %23, %25 : vector<128x8xf32>
    %cst_6 = arith.constant 0.000000e+00 : f32
    %27 = vector.broadcast %cst_6 : f32 to vector<128x8xf32>
    %28 = arith.maximumf %22, %27 : vector<128x8xf32>
    %29 = arith.truncf %28 : vector<128x8xf32> to vector<128x8xbf16>
    %c0_7 = arith.constant 0 : index
    %c0_8 = arith.constant 0 : index
    %30 = vector.load %arg4[%c0_7, %c0_8] : memref<8x4xbf16, #tpu.memory_space<vmem>>, vector<8x4xbf16>
    %cst_9 = arith.constant dense<0.000000e+00> : vector<128x4xf32>
    %31 = tpu.matmul %29, %30, %cst_9 {dimension_numbers = #tpu.dot_dimension_numbers<[1], [0], [0], [1], [0, 0, 1, 1], [], []>} : vector<128x8xbf16>, vector<8x4xbf16>, vector<128x4xf32> -> vector<128x4xf32>
    %32 = vector.extract_strided_slice %16 {offsets = [1, 0], sizes = [1, 4], strides = [1, 1]} : vector<4x16xf32> to vector<1x4xf32>
    %33 = vector.broadcast %32 : vector<1x4xf32> to vector<128x4xf32>
    %34 = arith.addf %31, %33 : vector<128x4xf32>
    %cst_10 = arith.constant 0.000000e+00 : f32
    %35 = vector.broadcast %cst_10 : f32 to vector<128x4xf32>
    %36 = arith.maximumf %34, %35 : vector<128x4xf32>
    %37 = arith.truncf %36 : vector<128x4xf32> to vector<128x4xbf16>
    %c0_11 = arith.constant 0 : index
    %c0_12 = arith.constant 0 : index
    %38 = vector.load %arg5[%c0_11, %c0_12] : memref<4x8xbf16, #tpu.memory_space<vmem>>, vector<4x8xbf16>
    %cst_13 = arith.constant dense<0.000000e+00> : vector<128x8xf32>
    %39 = tpu.matmul %37, %38, %cst_13 {dimension_numbers = #tpu.dot_dimension_numbers<[1], [0], [0], [1], [0, 0, 1, 1], [], []>} : vector<128x4xbf16>, vector<4x8xbf16>, vector<128x8xf32> -> vector<128x8xf32>
    %40 = vector.extract_strided_slice %16 {offsets = [2, 0], sizes = [1, 8], strides = [1, 1]} : vector<4x16xf32> to vector<1x8xf32>
    %41 = vector.broadcast %40 : vector<1x8xf32> to vector<128x8xf32>
    %42 = arith.addf %39, %41 : vector<128x8xf32>
    %43 = arith.truncf %26 : vector<128x8xf32> to vector<128x8xbf16>
    %c0_14 = arith.constant 0 : index
    %c0_15 = arith.constant 0 : index
    %44 = vector.load %arg6[%c0_14, %c0_15] : memref<8x8xbf16, #tpu.memory_space<vmem>>, vector<8x8xbf16>
    %cst_16 = arith.constant dense<0.000000e+00> : vector<128x8xf32>
    %45 = tpu.matmul %43, %44, %cst_16 {dimension_numbers = #tpu.dot_dimension_numbers<[1], [0], [0], [1], [0, 0, 1, 1], [], []>} : vector<128x8xbf16>, vector<8x8xbf16>, vector<128x8xf32> -> vector<128x8xf32>
    %46 = vector.extract_strided_slice %16 {offsets = [3, 0], sizes = [1, 8], strides = [1, 1]} : vector<4x16xf32> to vector<1x8xf32>
    %47 = vector.broadcast %46 : vector<1x8xf32> to vector<128x8xf32>
    %48 = arith.addf %45, %47 : vector<128x8xf32>
    %49 = arith.addf %42, %48 : vector<128x8xf32>
    %50 = tpu.transpose %49, [1, 0] : vector<128x8xf32> -> vector<8x128xf32>
    %c0_17 = arith.constant 0 : index
    %c0_18 = arith.constant 0 : index
    %c0_19 = arith.constant 0 : index
    %51 = vector.load %arg8[%c0_17, %c0_18, %c0_19] : memref<1x8x128xf32, #tpu.memory_space<vmem>>, vector<1x8x128xf32>
    %52 = vector.shape_cast %51 : vector<1x8x128xf32> to vector<8x128xf32>
    %53 = vector.shape_cast %50 : vector<8x128xf32> to vector<1x8x128xf32>
    tpu.vector_store %arg8[%c0_17, %c0_18, %c0_19], %53 {strides = array<i32>} : memref<1x8x128xf32, #tpu.memory_space<vmem>>, vector<1x8x128xf32>,
    return
  }
  func.func @transform_0(%arg0: i32, %arg1: i32) -> (i32, i32, i32, i32) {
    %c0_i32 = arith.constant 0 : i32
    %c0_i32_0 = arith.constant 0 : i32
    %c0_i32_1 = arith.constant 0 : i32
    %c0_i32_2 = arith.constant 0 : i32
    return %arg0, %c0_i32, %c0_i32_0, %c0_i32_1 : i32, i32, i32, i32
  }
  func.func @transform_1(%arg0: i32, %arg1: i32) -> (i32, i32) {
    %c0_i32 = arith.constant 0 : i32
    %c0_i32_0 = arith.constant 0 : i32
    %c0_i32_1 = arith.constant 0 : i32
    return %c0_i32, %c0_i32_0 : i32, i32
  }
  func.func @transform_2(%arg0: i32, %arg1: i32) -> (i32, i32) {
    %c0_i32 = arith.constant 0 : i32
    %c0_i32_0 = arith.constant 0 : i32
    %c0_i32_1 = arith.constant 0 : i32
    return %c0_i32, %c0_i32_0 : i32, i32
  }
  func.func @transform_3(%arg0: i32, %arg1: i32) -> (i32, i32) {
    %c0_i32 = arith.constant 0 : i32
    %c0_i32_0 = arith.constant 0 : i32
    %c0_i32_1 = arith.constant 0 : i32
    return %c0_i32, %c0_i32_0 : i32, i32
  }
  func.func @transform_4(%arg0: i32, %arg1: i32) -> (i32, i32) {
    %c0_i32 = arith.constant 0 : i32
    %c0_i32_0 = arith.constant 0 : i32
    %c0_i32_1 = arith.constant 0 : i32
    return %c0_i32, %c0_i32_0 : i32, i32
  }
  func.func @transform_5(%arg0: i32, %arg1: i32) -> (i32, i32) {
    %c0_i32 = arith.constant 0 : i32
    %c0_i32_0 = arith.constant 0 : i32
    %c0_i32_1 = arith.constant 0 : i32
    return %c0_i32, %c0_i32_0 : i32, i32
  }
  func.func @transform_6(%arg0: i32, %arg1: i32) -> (i32, i32, i32) {
    %c0_i32 = arith.constant 0 : i32
    %c0_i32_0 = arith.constant 0 : i32
    return %arg0, %c0_i32, %arg1 : i32, i32, i32
  }
}

</mosaic_0001>

<bundles_post_ra>
// kernel: tpu_custom_call.1
= control target key start
LH: loop header
LB: loop body
LE: loop exit
PB: predicated region body
PF: predicated region fallthrough
CT: control target
= control target key end

     0   :  { %s2579_s0 = inlined_call_operand.vmem [shape: bf16[2,18,18,4], index: 0, kind: input, shape index: {}]   ;;  %s2580_s1 = inlined_call_operand.vmem [shape: bf16[36,16], index: 1, kind: input, shape index: {}]   ;;  %s2581_s2 = inlined_call_operand.vmem [shape: bf16[8,4], index: 2, kind: input, shape index: {}]   ;;  %s2582_s3 = inlined_call_operand.vmem [shape: bf16[4,8], index: 3, kind: input, shape index: {}]   ;;  %s2583_s4 = inlined_call_operand.vmem [shape: bf16[8,8], index: 4, kind: input, shape index: {}]   ;;  %s2584_s5 = inlined_call_operand.vmem [shape: f32[4,16], index: 5, kind: input, shape index: {}]   ;;  %s2585_s6 = inlined_call_operand.hbm [shape: f32[2,8,256], index: 6, kind: output, shape index: {}]  }
   0x1   :  { %2586 = sst [smem:[#allocation5_spill]] %s2579_s0 }
   0x2   :  { %11 = vsyncpa [#allocation3], 0 }
   0x3   :  { %13 = vsyncpa [#allocation3 + $0x1], 0  ;;  %s2043_s21 = smov 0   ;;  %s2045_s22 = smov 0  }
   0x4   :  { %s2047_s23 = smov 0   ;;  %s2049_s24 = smov 0  }
   0x5   :  { %s2051_s25 = smov 0   ;;  %s2053_s26 = smov 0  }
   0x6   :  { %s2055_s27 = smov 0   ;;  %s2057_s28 = smov 0  }
   0x7 LB: > { %s1561_s29 = sadd.s32 4294967295, %s1996_s28   ;;  %s1562_s30 = sadd.s32 4294967294, %s1996_s28   ;;  %s1996_s28 = sphi %s2057_s28, %s19_s28   ;;  %s1992_s27 = sphi %s2055_s27, %s2596_s27   ;;  %s1988_s26 = sphi %s2053_s26, %s2595_s26   ;;  %s1984_s25 = sphi %s2051_s25, %s2594_s25   ;;  %s1980_s24 = sphi %s2049_s24, %s2593_s24   ;;  %s1976_s23 = sphi %s2047_s23, %s2592_s23   ;;  %s1972_s22 = sphi %s2045_s22, %s2591_s22   ;;  %s1968_s21 = sphi %s2043_s21, %s2590_s21  }
   0x8   : > { %s28_s7 = sadd.s32 1, %s1988_s26  ;;  %s31_s8 = sadd.s32 1, %s1992_s27 }
   0x9   : > { %p29_p0 = scmp.ge.s32.totalorder %s28_s7, 2  ;;  %p181_p1 = scmp.ne.s32.totalorder %s1976_s23, %s1972_s22 }
   0xa   : > { %p182_p2 = scmp.eq.s32.totalorder %s1561_s29, 3  ;;  %p187_p5 = scmp.ne.s32.totalorder %s1972_s22, %s1968_s21 }
   0xb   : > { %s2598_s7 = smov (%p29_p0, %s28_s7), 0  ;;  %s2600_s8 = smov (!%p29_p0, %s31_s8), %s1992_s27 }
   0xc   : > { %s167_s9 = ssub.s32 %s1988_s26, %s2598_s7  ;;  %p2094_p3 = por %p182_p2, %p181_p1 }
   0xd   : > { %p33_p4 = scmp.ge.s32.totalorder %s2600_s8, 2  ;;  %p188_p6 = scmp.eq.s32.totalorder %s1562_s30, 3 }
   0xe   : > { %p1565_p7 = scmp.ge.s32.totalorder %s1996_s28, 1  ;;  %p229_p9 = scmp.lt.s32.totalorder %s1996_s28, 5 }
   0xf   : > { %s2602_s8 = smov (%p33_p4, %s2600_s8), 0  ;;  %p2103_p8 = por %p188_p6, %p187_p5 }
  0x10   : > { %s166_s12 = ssub.s32 %s1992_s27, %s2602_s8  ;;  %s171_s13 = sadd.s32 1, %s1976_s23 }
  0x11   : > { %s168_s14 = sor.u32 %s167_s9, %s166_s12  ;;  %p230_p10 = pnand %p1565_p7, %p229_p9 }
  0x12   : > { %p169_p11 = scmp.eq.s32.totalorder %s168_s14, 0  ;;  %p259_p12 = scmp.lt.s32.totalorder (!%p230_p10), %s1984_s25, 1  ;;  %vm476_vm0 = vcmask (!%p230_p10), 1046528   ;;  %vm363_vm1 = vsmask.f32 (!%p230_p10), 7424  ;;  %vm833_vm2 = vcmask (!%p230_p10), 1041408  }
  0x13   : > { %233 = sbr.rel (%p230_p10) target bundleno = 1084 (0x43c), region = 44  ;;  %s2589_s0 = sld [smem:[#allocation5_spill]] (!%p230_p10)  ;;  %vm659_vm3 = vcmask (!%p230_p10), 31744   ;;  %vm676_vm4 = vcmask (!%p230_p10), 64512   ;;  %vm693_vm5 = vcmask (!%p230_p10), 97280   ;;  %vm710_vm6 = vcmask (!%p230_p10), 130048  }
  0x14   : > { %s2112_s15 = scalar_select %p169_p11, %s1976_s23, %s171_s13  }
  0x15   : > { %s1631_s17 = smul.u32 (!%p230_p10), 96, %s1980_s24  ;;  %s1998_s9 = smov (!%p230_p10), 12   ;;  %vm727_vm7 = vcmask (!%p230_p10), 162816   ;;  %vm744_vm8 = vcmask (!%p230_p10), 195584   ;;  %vm761_vm9 = vcmask (!%p230_p10), 228352   ;;  %vm778_vm10 = vcmask (!%p230_p10), 261120  }
  0x16   : > { %s1999_s12 = smov (!%p230_p10), 20   ;;  %s2000_s13 = smov (!%p230_p10), 8   ;;  %vm816_vm11 = vcmask (!%p230_p10), 293888   ;;  %vm1007_vm12 = vcmask (!%p230_p10), 1043456  }
  0x17   : > { %s2001_s14 = smov (!%p230_p10), 4   ;;  %s2003_s19 = smov (!%p230_p10), 24  }
  0x18   : > { %s256_s20 = sand.u32 (!%p230_p10), 1, %s1972_s22  }
  0x1a   : > { %s260_s16 = scalar_select %p259_p12, %s1984_s25, 1 }
  0x1c   : > { %s1798_s18 = smul.u32 216, %s260_s16  ;;  %s2002_s16 = smov 16  }
  0x1e   : > { %s263_s29 = scalar_lea.vmem %s2589_s0, %s1798_s18  ;;  %s1472_s18 = scalar_lea.sflag [#allocation3], %s256_s20 }
  0x1f   : > { %s2120_s30 = scalar_lea.vmem %s263_s29, %s1631_s17  ;;  %s2004_s17 = smov 28  }
  0x20   : > { %v2123_v0 = vld [vmem:[%s2120_s30 + $0x18] sm:$0xff]   ;;  %v2126_v1 = vld [vmem:[%s2120_s30 + $0xc] sm:$0xff]   ;;  %v1881_v2 = vld [vmem:[%s2120_s30 + $0x14] ss:$0 sps:$4 sm:$0x11]   ;;  %s2005_s29 = smov 32  }
  0x21   : > { %524 = vrot.lane.b32.xlu1 %v2123_v0, %s1998_s9  ;;  %v2132_v3 = vld [vmem:[%s2120_s30] sm:$0xff]   ;;  %522 = vrot.lane.b32.xlu0 %v2126_v1, %s1998_s9  ;;  %v480_v4 = vrot.slane %v2126_v1, 1  ;;  %v481_v5 = vrot.slane %v1881_v2, 1  ;;  %v1883_v6 = vld [vmem:[%s2120_s30 + $0x8] ss:$0 sps:$4 sm:$0x11]  }
  0x22   : > { %v477_v7 = vrot.slane %v2132_v3, 1  ;;  %v365_v8 = vshrl.u32 %v2132_v3, 16  ;;  %v367_v9 = vshll.u32 %v2132_v3, 16  ;;  %v377_v10 = vshrl.u32 %v2126_v1, 16  ;;  %v2149_v22 = vld [vmem:[%s2120_s30 + $0x24] sm:$0xff]   ;;  %v2184_v53 = vld [vmem:[%s2120_s30 + $0x54] sm:$0xff]  }
  0x23   : > { %v482_v11 = vsel %vm476_vm0, %v480_v4, %v481_v5  ;;  %v478_v12 = vrot.slane %v1883_v6, 1  ;;  %v372_v13 = vshll.u32 %v1883_v6, 16  ;;  %v1884_v14 = vld [vmem:[%s2120_s30 + $0x20] ss:$0 sps:$4 sm:$0x11]   ;;  %v379_v15 = vshll.u32 %v2126_v1, 16 }
  0x24   : > { %v369_v16 = vrot.slane %v367_v9, 1  ;;  %v384_v17 = vshll.u32 %v1881_v2, 16  ;;  %v391_v18 = vshll.u32 %v2123_v0, 16  ;;  %v483_v24 = vrot.slane %v2123_v0, 1  ;;  %v2166_v38 = vld [vmem:[%s2120_s30 + $0x48] sm:$0xff]   ;;  %v2194_v59 = vld [vmem:[%s2120_s30 + $0x60] sm:$0xff]  }
  0x25   : > { %572 = vrot.lane.b32.xlu0 %v482_v11, %s1999_s12  ;;  %v479_v19 = vsel %vm476_vm0, %v477_v7, %v478_v12  ;;  %v374_v20 = vrot.slane %v372_v13, 1  ;;  %v381_v21 = vrot.slane %v379_v15, 1  ;;  %v389_v26 = vshrl.u32 %v2123_v0, 16  ;;  %v2157_v32 = vld [vmem:[%s2120_s30 + $0x2c] ss:$0 sps:$4 sm:$0x11]  }
  0x26   : > { %501 = vrot.lane.b32.xlu1 %v479_v19, %s2000_s13  ;;  %v370_v23 = vor.u32 %v369_v16, %v365_v8  ;;  %v386_v25 = vrot.slane %v384_v17, 1  ;;  %v484_v27 = vrot.slane %v1884_v14, 1  ;;  %v393_v29 = vrot.slane %v391_v18, 1  ;;  %v1892_v45 = vld [vmem:[%s2120_s30 + $0x50] ss:$0 sps:$4 sm:$0x11]  }
  0x27   : > { %v382_v28 = vor.u32 %v381_v21, %v377_v10  ;;  %v396_v30 = vshll.u32 %v1884_v14, 16  ;;  %v403_v33 = vshll.u32 %v2149_v22, 16  ;;  %v401_v39 = vshrl.u32 %v2149_v22, 16  ;;  %v1894_v55 = vld [vmem:[%s2120_s30 + $0x5c] ss:$0 sps:$4 sm:$0x11]  }
  0x28   : > { %v375_v31 = vsel %vm363_vm1, %v370_v23, %v374_v20  ;;  %v2163_v35 = vsel %vm476_vm0, %v483_v24, %v484_v27  ;;  %v394_v36 = vor.u32 %v393_v29, %v389_v26  ;;  %v408_v41 = vshll.u32 %v2157_v32, 16  ;;  %v2197_v60 = vld [vmem:[%s2120_s30 + $0x6c] sm:$0xff]   ;;  %v1899_v4 = vld [vmem:[%s2580_s1] sm:$0xff]   ;;  %v1896_v7 = vld [vmem:[%s2120_s30 + $0x68] ss:$0 sps:$4 sm:$0x11]  }
  0x29   : > { %460 = vrot.lane.b32.xlu0 %v375_v31, %s2001_s14  ;;  %v387_v34 = vsel %vm363_vm1, %v382_v28, %v386_v25  ;;  %v398_v37 = vrot.slane %v396_v30, 1  ;;  %v405_v40 = vrot.slane %v403_v33, 1  ;;  %v486_v43 = vrot.slane %v2149_v22, 1  ;;  %1670 = vmatprep.subr.bf16.mxu0 %v1899_v4  ;;  %v1900_v14 = vld [vmem:[%s2580_s1 + $0x8] sm:$0xff]   ;;  %v2242_v33 = vld [vmem:[%s2120_s30 + $0x30] sm:$0xff]  }
  0x2a   : > { %503 = vrot.lane.b32.xlu1 %v482_v11, %s2000_s13  ;;  %v487_v44 = vrot.slane %v2157_v32, 1  ;;  %v437_v46 = vshrl.u32 %v2166_v38, 16  ;;  %v439_v47 = vshll.u32 %v2166_v38, 16  ;;  %v495_v48 = vrot.slane %v2166_v38, 1  ;;  %1671 = vmatpush3.bf16.msra.mxu0 %v1899_v4 }
  0x2b   : > { %v2174_v42 = vsel %vm363_vm1, %v394_v36, %v398_v37  ;;  %v406_v49 = vor.u32 %v405_v40, %v401_v39  ;;  %v410_v50 = vrot.slane %v408_v41, 1  ;;  %v444_v51 = vshll.u32 %v1892_v45, 16  ;;  %v1898_v20 = vld [vmem:[%s2120_s30 + $0x74] ss:$0 sps:$4 sm:$0x11]   ;;  %1672 = vmatprep.subr.bf16.mxu0 %v1900_v14 }
  0x2c   : > { %v496_v52 = vrot.slane %v1892_v45, 1  ;;  %v441_v54 = vrot.slane %v439_v47, 1  ;;  %v449_v58 = vshrl.u32 %v2184_v53, 16  ;;  %v451_v62 = vshll.u32 %v2184_v53, 16 }
  0x2d   : > { %462 = vrot.lane.b32.xlu0 %v387_v34, %s2001_s14  ;;  %v446_v56 = vrot.slane %v444_v51, 1  ;;  %v456_v63 = vshll.u32 %v1894_v55, 16  ;;  %v498_v2 = vrot.slane %v2184_v53, 1  ;;  %v2207_v5 = vsel %vm363_vm1, %v406_v49, %v410_v50  ;;  %v1901_v31 = vld [vmem:[%s2580_s1 + $0x10] ss:$0 sps:$4 sm:$0x33]  }
  0x2e   : > { %574 = vrot.lane.b32.xlu1 %v2163_v35, %s1999_s12  ;;  %v2190_v57 = vsel %vm476_vm0, %v495_v48, %v496_v52  ;;  %v442_v61 = vor.u32 %v441_v54, %v437_v46  ;;  %v499_v6 = vrot.slane %v1894_v55, 1  ;;  %v542_v8 = vshrl.u32 %v2194_v59, 16  ;;  %1673 = vmatpush3.bf16.msra.mxu0 %v1900_v14  ;;  %v1888_v46 = vld [vmem:[%s2120_s30 + $0x38] ss:$0 sps:$4 sm:$0x11]   ;;  %v2274_v50 = vld [vmem:[%s2120_s30 + $0x3c] sm:$0xff]  }
  0x2f   : > { %v544_v9 = vshll.u32 %v2194_v59, 16  ;;  %v453_v11 = vrot.slane %v451_v62, 1  ;;  %v458_v12 = vrot.slane %v456_v63, 1  ;;  %v569_v13 = vrot.slane %v2194_v59, 1  ;;  %1794 = vmatprep.subr.msk.bf16.mxu0 %vm833_vm2, %v1901_v31 }
  0x30   : > { %v2215_v10 = vsel %vm363_vm1, %v442_v61, %v446_v56  ;;  %v2222_v15 = vsel %vm476_vm0, %v498_v2, %v499_v6  ;;  %v549_v17 = vshll.u32 %v1896_v7, 16  ;;  %v570_v18 = vrot.slane %v1896_v7, 1  ;;  %v1890_v55 = vld [vmem:[%s2120_s30 + $0x44] ss:$0 sps:$4 sm:$0x11]   ;;  %s1627_s30 = sshll.u32 %s1984_s25, 1 }
  0x31   : > { %553 = vrot.lane.b32.xlu0 %v387_v34, %s2002_s16  ;;  %v546_v16 = vrot.slane %v544_v9, 1  ;;  %v454_v19 = vor.u32 %v453_v11, %v449_v58  ;;  %v613_v21 = vshrl.u32 %v2197_v60, 16  ;;  %v615_v26 = vshll.u32 %v2197_v60, 16 }
  0x32   : > { %555 = vrot.lane.b32.xlu1 %v2174_v42, %s2002_s16  ;;  %v551_v24 = vrot.slane %v549_v17, 1  ;;  %v2229_v25 = vsel %vm476_vm0, %v569_v13, %v570_v18  ;;  %v620_v28 = vshll.u32 %v1898_v20, 16  ;;  %v640_v29 = vrot.slane %v2197_v60, 1 }
  0x33   : > { %v547_v23 = vor.u32 %v546_v16, %v542_v8  ;;  %v2235_v27 = vsel %vm363_vm1, %v454_v19, %v458_v12  ;;  %v641_v30 = vrot.slane %v1898_v20, 1  ;;  %v617_v36 = vrot.slane %v615_v26, 1 }
  0x34   : > { %v622_v37 = vrot.slane %v620_v28, 1  ;;  %v488_v41 = vsel %vm476_vm0, %v486_v43, %v487_v44  ;;  %v835_v45 = vsel %vm833_vm2, %v1901_v31, 0  ;;  %v415_v47 = vshll.u32 %v2242_v33, 16 }
  0x35   : > { %593 = vrot.lane.b32.xlu0 %v2123_v0, %s2003_s19  ;;  %v2245_v34 = vsel %vm363_vm1, %v547_v23, %v551_v24  ;;  %v2248_v39 = vsel %vm476_vm0, %v640_v29, %v641_v30  ;;  %v618_v40 = vor.u32 %v617_v36, %v613_v21  ;;  %1675 = vmatpush3.bf16.msra.mxu0 %v835_v45  ;;  %v413_v32 = vshrl.u32 %v2242_v33, 16 }
  0x36   : > { %595 = vrot.lane.b32.xlu1 %v2149_v22, %s2003_s19  ;;  %v420_v43 = vshll.u32 %v1888_v46, 16  ;;  %v489_v52 = vrot.slane %v2242_v33, 1  ;;  %v490_v54 = vrot.slane %v1888_v46, 1  ;;  %v425_v58 = vshrl.u32 %v2274_v50, 16 }
  0x37   : > { %v2264_v48 = vsel %vm363_vm1, %v618_v40, %v622_v37  ;;  %v432_v62 = vshll.u32 %v1890_v55, 16  ;;  %v493_v6 = vrot.slane %v1890_v55, 1 }
  0x38   : > { %v422_v49 = vrot.slane %v420_v43, 1  ;;  %v491_v56 = vsel %vm476_vm0, %v489_v52, %v490_v54 }
  0x39   : > { %624 = vrot.lane.b32.xlu0 %v2174_v42, %s2004_s17  ;;  %v434_v2 = vrot.slane %v432_v62, 1 }
  0x3a   : > { %626 = vrot.lane.b32.xlu1 %v2207_v5, %s2004_s17 }
  0x3d   : > { %643 = vrot.lane.b32.xlu0 %v2163_v35, %s2005_s29 }
  0x3e   : > { %464 = vrot.lane.b32.xlu1 %v2174_v42, %s2001_s14  ;;  %v417_v42 = vrot.slane %v415_v47, 1 }
  0x40   : > { %v418_v44 = vor.u32 %v417_v42, %v413_v32 }
  0x41   : > { %645 = vrot.lane.b32.xlu0 %v488_v41, %s2005_s29 }
  0x42   : > { %466 = vrot.lane.b32.xlu1 %v2207_v5, %s2001_s14  ;;  %v423_v51 = vsel %vm363_vm1, %v418_v44, %v422_v49 }
  0x45   : > { %505 = vrot.lane.b32.xlu0 %v2163_v35, %s2000_s13  ;;  %v427_v35 = vshll.u32 %v2274_v50, 16 }
  0x46   : > { %507 = vrot.lane.b32.xlu1 %v488_v41, %s2000_s13 }
  0x47   : > { %v429_v61 = vrot.slane %v427_v35, 1 }
  0x49   : > { %526 = vrot.lane.b32.xlu0 %v2149_v22, %s1998_s9  ;;  %v430_v63 = vor.u32 %v429_v61, %v425_v58 }
  0x4a   : > { %528 = vrot.lane.b32.xlu1 %v2242_v33, %s1998_s9 }
  0x4b   : > { %v435_v4 = vsel %vm363_vm1, %v430_v63, %v434_v2 }
  0x4d   : > { %557 = vrot.lane.b32.xlu0 %v2207_v5, %s2002_s16  ;;  %v492_v5 = vrot.slane %v2274_v50, 1 }
  0x4e   : > { %559 = vrot.lane.b32.xlu1 %v423_v51, %s2002_s16 }
  0x4f   : > { %v494_v7 = vsel %vm476_vm0, %v492_v5, %v493_v6 }
  0x51   : > { %576 = vrot.lane.b32.xlu0 %v488_v41, %s1999_s12 }
  0x52   : > { %578 = vrot.lane.b32.xlu1 %v491_v56, %s1999_s12 }
  0x55   : > { %597 = vrot.lane.b32.xlu0 %v2242_v33, %s2003_s19 }
  0x56   : > { %599 = vrot.lane.b32.xlu1 %v2274_v50, %s2003_s19 }
  0x59   : > { %628 = vrot.lane.b32.xlu0 %v423_v51, %s2004_s17 }
  0x5a   : > { %630 = vrot.lane.b32.xlu1 %v435_v4, %s2004_s17 }
  0x5d   : > { %647 = vrot.lane.b32.xlu0 %v491_v56, %s2005_s29 }
  0x5e   : > { %468 = vrot.lane.b32.xlu1 %v423_v51, %s2001_s14 }
  0x61   : > { %649 = vrot.lane.b32.xlu0 %v494_v7, %s2005_s29 }
  0x62   : > { %470 = vrot.lane.b32.xlu1 %v435_v4, %s2001_s14 }
  0x65   : > { %509 = vrot.lane.b32.xlu0 %v491_v56, %s2000_s13 }
  0x66   : > { %511 = vrot.lane.b32.xlu1 %v494_v7, %s2000_s13 }
  0x69   : > { %530 = vrot.lane.b32.xlu0 %v2274_v50, %s1998_s9 }
  0x6a   : > { %532 = vrot.lane.b32.xlu1 %v2166_v38, %s1998_s9 }
  0x6d   : > { %561 = vrot.lane.b32.xlu0 %v435_v4, %s2002_s16 }
  0x6e   : > { %563 = vrot.lane.b32.xlu1 %v2215_v10, %s2002_s16 }
  0x71   : > { %580 = vrot.lane.b32.xlu0 %v494_v7, %s1999_s12 }
  0x72   : > { %582 = vrot.lane.b32.xlu1 %v2190_v57, %s1999_s12 }
  0x75   : > { %601 = vrot.lane.b32.xlu0 %v2166_v38, %s2003_s19 }
  0x76   : > { %603 = vrot.lane.b32.xlu1 %v2184_v53, %s2003_s19 }
  0x79   : > { %632 = vrot.lane.b32.xlu0 %v2215_v10, %s2004_s17 }
  0x7a   : > { %634 = vrot.lane.b32.xlu1 %v2235_v27, %s2004_s17 }
  0x7d   : > { %651 = vrot.lane.b32.xlu0 %v2190_v57, %s2005_s29 }
  0x7e   : > { %472 = vrot.lane.b32.xlu1 %v2215_v10, %s2001_s14 }
  0x81   : > { %653 = vrot.lane.b32.xlu0 %v2222_v15, %s2005_s29 }
  0x82   : > { %474 = vrot.lane.b32.xlu1 %v2235_v27, %s2001_s14  ;;  %s2006_s14 = smov 120  }
  0x85   : > { %513 = vrot.lane.b32.xlu0 %v2190_v57, %s2000_s13 }
  0x86   : > { %515 = vrot.lane.b32.xlu1 %v2222_v15, %s2000_s13 }
  0x89   : > { %534 = vrot.lane.b32.xlu0 %v2184_v53, %s1998_s9 }
  0x8a   : > { %536 = vrot.lane.b32.xlu1 %v2194_v59, %s1998_s9  ;;  %s1483_s9 = sadd.s32 %s1980_s24, %s1627_s30  ;;  %s2007_s24 = smov [#allocation2]  }
  0x8b   : > { %s1906_s25 = sshll.u32 %s2007_s24, 4  ;;  %s1907_s25 = int_to_ptr.vmem [resolvable:$false] %s1906_s25 }
  0x8d   : > { %565 = vrot.lane.b32.xlu0 %v2235_v27, %s2002_s16 }
  0x8e   : > { %567 = vrot.lane.b32.xlu1 %v2245_v34, %s2002_s16 }
  0x91   : > { %584 = vrot.lane.b32.xlu0 %v2222_v15, %s1999_s12 }
  0x92   : > { %586 = vrot.lane.b32.xlu1 %v2229_v25, %s1999_s12 }
  0x93   : > { %v525_v57 = vpop.permute.xlu1 %524  ;;  %v523_v8 = vpop.permute.xlu0 %522 }
  0x95   : > { %605 = vrot.lane.b32.xlu0 %v2194_v59, %s2003_s19 }
  0x96   : > { %607 = vrot.lane.b32.xlu1 %v2197_v60, %s2003_s19 }
  0x97   : > { %v573_v9 = vpop.permute.xlu0 %572 }
  0x98   : > { %v502_v10 = vpop.permute.xlu1 %501 }
  0x99   : > { %636 = vrot.lane.b32.xlu0 %v2245_v34, %s2004_s17 }
  0x9a   : > { %638 = vrot.lane.b32.xlu1 %v2264_v48, %s2004_s17 }
  0x9b   : > { %v461_v11 = vpop.permute.xlu0 %460 }
  0x9c   : > { %v504_v12 = vpop.permute.xlu1 %503  ;;  %v661_v60 = vsel %vm659_vm3, %v2132_v3, %v461_v11 }
  0x9d   : > { %655 = vrot.lane.b32.xlu0 %v2229_v25, %s2005_s29  ;;  %v678_v17 = vsel %vm676_vm4, %v661_v60, %v502_v10 }
  0x9e   : > { %657 = vrot.lane.b32.xlu1 %v2248_v39, %s2005_s29  ;;  %v695_v21 = vsel %vm693_vm5, %v678_v17, %v523_v8  ;;  %s1566_s29 = sshll.u32 %s256_s20, 3 }
  0x9f   : > { %v463_v59 = vpop.permute.xlu0 %462  ;;  %s258_s12 = scalar_lea.vmem [#allocation2], %s1566_s29  ;;  %s1908_s29 = scalar_lea.vmem %s1907_s25, 256 }
  0xa0   : > { %v575_v13 = vpop.permute.xlu1 %574  ;;  %v663_v16 = vsel %vm659_vm3, %v2126_v1, %v463_v59  ;;  %s1487_s13 = sshll.u32 %s258_s12, 4  ;;  %s2523_s13 = int_to_ptr.vmem [resolvable:$true] %s1487_s13 }
  0xa1   : > { %v680_v19 = vsel %vm676_vm4, %v663_v16, %v504_v12  ;;  %s1902_s0 = scalar_lea.vmem %s2523_s13, 128  ;;  %p1909_p2 = scmp.lt.s32.totalorder %s2523_s13, %s1907_s25 }
  0xa2   : > { %v697_v3 = vsel %vm693_vm5, %v680_v19, %v525_v57  ;;  %p1903_p13 = scmp.ne.s32.totalorder %s2523_s13, %s1902_s0  ;;  %p1910_p4 = scmp.lt.s32.totalorder %s1908_s29, %s1902_s0 }
  0xa3   : > { %v554_v14 = vpop.permute.xlu0 %553 }
  0xa4   : > { %v556_v15 = vpop.permute.xlu1 %555  ;;  %v712_v23 = vsel %vm710_vm6, %v695_v21, %v554_v14  ;;  %p1904_p0 = pnand %p1903_p13, %p2094_p3  ;;  %p1911_p5 = por %p1910_p4, %p1909_p2 }
  0xa5   : > { %v729_v1 = vsel %vm727_vm7, %v712_v23, %v573_v9  ;;  %v714_v26 = vsel %vm710_vm6, %v697_v3, %v556_v15 }
  0xa6   : > { %v731_v34 = vsel %vm727_vm7, %v714_v26, %v575_v13  ;;  %p1905_p1 = pneg %p1904_p0 }
  0xa7   : > { %v594_v18 = vpop.permute.xlu0 %593 }
  0xa8   : > { %v596_v20 = vpop.permute.xlu1 %595  ;;  %v746_v27 = vsel %vm744_vm8, %v729_v1, %v594_v18  ;;  %p1912_p6 = pnand %p1911_p5, %p1905_p1 }
  0xa9   : > { %v748_v36 = vsel %vm744_vm8, %v731_v34, %v596_v20 }
  0xab   : > { %v625_v24 = vpop.permute.xlu0 %624 }
  0xac   : > { %v627_v25 = vpop.permute.xlu1 %626  ;;  %v763_v28 = vsel %vm761_vm9, %v746_v27, %v625_v24 }
  0xad   : > { %v765_v37 = vsel %vm761_vm9, %v748_v36, %v627_v25 }
  0xaf   : > { %v644_v29 = vpop.permute.xlu0 %643 }
  0xb0   : > { %v465_v30 = vpop.permute.xlu1 %464  ;;  %v780_v31 = vsel %vm778_vm10, %v763_v28, %v644_v29 }
  0xb1   : > { %1676 = vmatprep.mubr.msk.bf16.mxu0 %vm816_vm11, %v780_v31  ;;  %v665_v52 = vsel %vm659_vm3, %v2123_v0, %v465_v30 }
  0xb3   : > { %v646_v39 = vpop.permute.xlu0 %645 }
  0xb4   : > { %v467_v40 = vpop.permute.xlu1 %466  ;;  %v782_v41 = vsel %vm778_vm10, %v765_v37, %v646_v39 }
  0xb5   : > { %1677 = vmatmul.mubr.msk.bf16.vlgmr.msra.gmra.mrb[0].mxu0 %vm816_vm11, %v782_v41  ;;  %v667_v61 = vsel %vm659_vm3, %v2149_v22, %v467_v40 }
  0xb7   : > { %v506_v45 = vpop.permute.xlu0 %505 }
  0xb8   : > { %v508_v46 = vpop.permute.xlu1 %507  ;;  %v682_v54 = vsel %vm676_vm4, %v665_v52, %v506_v45 }
  0xb9   : > { %v684_v63 = vsel %vm676_vm4, %v667_v61, %v508_v46 }
  0xbb   : > { %v527_v47 = vpop.permute.xlu0 %526 }
  0xbc   : > { %v529_v48 = vpop.permute.xlu1 %528  ;;  %v699_v55 = vsel %vm693_vm5, %v682_v54, %v527_v47 }
  0xbd   : > { %v701_v4 = vsel %vm693_vm5, %v684_v63, %v529_v48 }
  0xbf   : > { %v558_v32 = vpop.permute.xlu0 %557 }
  0xc0   : > { %v560_v42 = vpop.permute.xlu1 %559  ;;  %v716_v56 = vsel %vm710_vm6, %v699_v55, %v558_v32 }
  0xc1   : > { %v718_v6 = vsel %vm710_vm6, %v701_v4, %v560_v42 }
  0xc3   : > { %v577_v43 = vpop.permute.xlu0 %576 }
  0xc4   : > { %v579_v44 = vpop.permute.xlu1 %578  ;;  %v733_v62 = vsel %vm727_vm7, %v716_v56, %v577_v43 }
  0xc5   : > { %v735_v8 = vsel %vm727_vm7, %v718_v6, %v579_v44 }
  0xc7   : > { %v598_v49 = vpop.permute.xlu0 %597 }
  0xc8   : > { %v600_v51 = vpop.permute.xlu1 %599  ;;  %v750_v2 = vsel %vm744_vm8, %v733_v62, %v598_v49 }
  0xc9   : > { %v752_v22 = vsel %vm744_vm8, %v735_v8, %v600_v51  ;;  %v978_v8 = vld [vmem:[%s2581_s2] sm:$0xf] }
  0xca   : > { %1795 = vmatprep.subr.msk.bf16.mxu0 %vm1007_vm12, %v978_v8 }
  0xcb   : > { %v629_v35 = vpop.permute.xlu0 %628 }
  0xcc   : > { %v631_v58 = vpop.permute.xlu1 %630  ;;  %v767_v0 = vsel %vm761_vm9, %v750_v2, %v629_v35 }
  0xcd   : > { %v769_v9 = vsel %vm761_vm9, %v752_v22, %v631_v58 }
  0xcf   : > { %v648_v5 = vpop.permute.xlu0 %647 }
  0xd0   : > { %v469_v7 = vpop.permute.xlu1 %468  ;;  %v784_v57 = vsel %vm778_vm10, %v767_v0, %v648_v5 }
  0xd1   : > { %1680 = vmatprep.mubr.msk.bf16.mxu0 %vm816_vm11, %v784_v57  ;;  %v669_v21 = vsel %vm659_vm3, %v2242_v33, %v469_v7 }
  0xd3   : > { %v650_v10 = vpop.permute.xlu0 %649 }
  0xd4   : > { %v471_v11 = vpop.permute.xlu1 %470  ;;  %v786_v12 = vsel %vm778_vm10, %v769_v9, %v650_v10 }
  0xd5   : > { %1681 = vmatmul.mubr.msk.bf16.gmra.mrb[4].mxu0 %vm816_vm11, %v786_v12  ;;  %v671_v26 = vsel %vm659_vm3, %v2274_v50, %v471_v11  ;;  %v1009_v11 = vsel %vm1007_vm12, %v978_v8, 0 }
  0xd6   : > { %1693 = vmatpush3.bf16.msra.mxu0 %v1009_v11 }
  0xd7   : > { %v510_v59 = vpop.permute.xlu0 %509 }
  0xd8   : > { %v512_v13 = vpop.permute.xlu1 %511  ;;  %v686_v23 = vsel %vm676_vm4, %v669_v21, %v510_v59  ;;  %v934_v59 = vlaneseq }
  0xd9   : > { %v688_v28 = vsel %vm676_vm4, %v671_v26, %v512_v13 }
  0xda   : > { %v2445_v13 = vshrl.u32 %v934_v59, 7 }
  0xdb   : > { %v531_v60 = vpop.permute.xlu0 %530 }
  0xdc   : > { %v533_v14 = vpop.permute.xlu1 %532  ;;  %v703_v3 = vsel %vm693_vm5, %v686_v23, %v531_v60  ;;  %v936_v60 = vsub.s32 0, %v2445_v13 }
  0xdd   : > { %v705_v30 = vsel %vm693_vm5, %v688_v28, %v533_v14  ;;  %v2451_v14 = vld [vmem:[%s2584_s5] sm:$0xf] }
  0xdf   : > { %v562_v15 = vpop.permute.xlu0 %561 }
  0xe0   : > { %v564_v16 = vpop.permute.xlu1 %563  ;;  %v720_v25 = vsel %vm710_vm6, %v703_v3, %v562_v15  ;;  %v2454_v15 = vrot.slane %v2451_v14, %v936_v60 }
  0xe1   : > { %v722_v34 = vsel %vm710_vm6, %v705_v30, %v564_v16 }
  0xe3   : > { %v581_v17 = vpop.permute.xlu0 %580 }
  0xe4   : > { %v583_v18 = vpop.permute.xlu1 %582  ;;  %v737_v27 = vsel %vm727_vm7, %v720_v25, %v581_v17 }
  0xe5   : > { %v739_v39 = vsel %vm727_vm7, %v722_v34, %v583_v18 }
  0xe7   : > { %v602_v19 = vpop.permute.xlu0 %601 }
  0xe8   : > { %v604_v20 = vpop.permute.xlu1 %603  ;;  %v754_v29 = vsel %vm744_vm8, %v737_v27, %v602_v19 }
  0xe9   : > { %v756_v50 = vsel %vm744_vm8, %v739_v39, %v604_v20 }
  0xeb   : > { %v633_v24 = vpop.permute.xlu0 %632 }
  0xec   : > { %v635_v1 = vpop.permute.xlu1 %634  ;;  %v771_v33 = vsel %vm761_vm9, %v754_v29, %v633_v24 }
  0xed   : > { %v773_v40 = vsel %vm761_vm9, %v756_v50, %v635_v1 }
  0xef   : > { %v652_v31 = vpop.permute.xlu0 %651 }
  0xf0   : > { %v473_v36 = vpop.permute.xlu1 %472  ;;  %v788_v37 = vsel %vm778_vm10, %v771_v33, %v652_v31 }
  0xf1   : > { %1684 = vmatprep.mubr.msk.bf16.mxu0 %vm816_vm11, %v788_v37  ;;  %v673_v55 = vsel %vm659_vm3, %v2166_v38, %v473_v36 }
  0xf3   : > { %v654_v41 = vpop.permute.xlu0 %653 }
  0xf4   : > { %v475_v45 = vpop.permute.xlu1 %474  ;;  %v790_v46 = vsel %vm778_vm10, %v773_v40, %v654_v41 }
  0xf5   : > { %1685 = vmatmul.mubr.msk.bf16.gmra.mrb[8].mxu0 %vm816_vm11, %v790_v46  ;;  %v675_v35 = vsel %vm659_vm3, %v2184_v53, %v475_v45 }
  0xf7   : > { %v514_v47 = vpop.permute.xlu0 %513 }
  0xf8   : > { %v516_v48 = vpop.permute.xlu1 %515  ;;  %v690_v56 = vsel %vm676_vm4, %v673_v55, %v514_v47 }
  0xf9   : > { %v692_v58 = vsel %vm676_vm4, %v675_v35, %v516_v48 }
  0xfb   : > { %v535_v32 = vpop.permute.xlu0 %534 }
  0xfc   : > { %v537_v42 = vpop.permute.xlu1 %536  ;;  %v707_v61 = vsel %vm693_vm5, %v690_v56, %v535_v32 }
  0xfd   : > { %v709_v63 = vsel %vm693_vm5, %v692_v58, %v537_v42 }
  0xff   : > { %v566_v43 = vpop.permute.xlu0 %565 }
 0x100   : > { %v568_v44 = vpop.permute.xlu1 %567  ;;  %v724_v2 = vsel %vm710_vm6, %v707_v61, %v566_v43 }
 0x101   : > { %v726_v0 = vsel %vm710_vm6, %v709_v63, %v568_v44 }
 0x103   : > { %v585_v49 = vpop.permute.xlu0 %584 }
 0x104   : > { %v587_v51 = vpop.permute.xlu1 %586  ;;  %v741_v5 = vsel %vm727_vm7, %v724_v2, %v585_v49 }
 0x105   : > { %v743_v38 = vsel %vm727_vm7, %v726_v0, %v587_v51 }
 0x107   : > { %v606_v52 = vpop.permute.xlu0 %605 }
 0x108   : > { %v608_v54 = vpop.permute.xlu1 %607  ;;  %v758_v53 = vsel %vm744_vm8, %v741_v5, %v606_v52 }
 0x109   : > { %v760_v6 = vsel %vm744_vm8, %v743_v38, %v608_v54 }
 0x10b   : > { %v637_v62 = vpop.permute.xlu0 %636 }
 0x10c   : > { %v639_v4 = vpop.permute.xlu1 %638  ;;  %v775_v7 = vsel %vm761_vm9, %v758_v53, %v637_v62 }
 0x10d   : > { %v777_v22 = vsel %vm761_vm9, %v760_v6, %v639_v4 }
 0x10f   : > { %v656_v57 = vpop.permute.xlu0 %655 }
 0x110   : > { %v658_v9 = vpop.permute.xlu1 %657  ;;  %v792_v10 = vsel %vm778_vm10, %v775_v7, %v656_v57 }
 0x111   : > { %v794_v12 = vsel %vm778_vm10, %v777_v22, %v658_v9  ;;  %1688 = vmatprep.mubr.msk.bf16.mxu0 %vm816_vm11, %v792_v10 }
 0x112   : > { %1689 = vmatmul.mubr.msk.bf16.gmra.mrb[12].mxu0 %vm816_vm11, %v794_v12 }
 0x188   : > { %v1678_v16 = vpop.f32.mrb[0].mxu0 }
 0x189   : > { %v940_v17 = vadd.f32 %v1678_v16, %v2454_v15  ;;  %v871_v18 = vpop.f32.mrb[1].mxu0 }
 0x18a   : > { %v938_v19 = vadd.f32 %v2454_v15, %v871_v18  ;;  %v1679_v20 = vpop.f32.mrb[2].mxu0 }
 0x18b   : > { %v941_v21 = vadd.f32 %v1679_v20, %v2454_v15  ;;  %v874_v23 = vpop.f32.mrb[3].mxu0  ;;  %v956_v24 = vmax.f32 %v940_v17, 0.0  ;;  %v1269_v20 = vld [vmem:[%s2583_s4] sm:$0xf] }
 0x18c   : > { %v939_v3 = vadd.f32 %v2454_v15, %v874_v23  ;;  %v954_v26 = vmax.f32 %v938_v19, 0.0 }
 0x18d   : > { %v957_v25 = vmax.f32 %v941_v21, 0.0  ;;  %v1262_v1 = vpack.c.bf16 %v941_v21, %v940_v17  ;;  %v981_v21 = vsub.s32 1, %v2445_v13 }
 0x18e   : > { %v955_v27 = vmax.f32 %v939_v3, 0.0  ;;  %v1261_v28 = vpack.c.bf16 %v939_v3, %v938_v19  ;;  %v1132_v19 = vld [vmem:[%s2582_s3] sm:$0x3] }
 0x18f   : > { %v971_v29 = vpack.c.bf16 %v957_v25, %v956_v24  ;;  %1284 = vrot.lane.b32.xlu1 %v1262_v1, %s2006_s14  ;;  %1796 = vmatprep.subr.msk.bf16.mxu1 %vm833_vm2, %v1132_v19  ;;  %v982_v23 = vrot.slane %v2451_v14, %v981_v21 }
 0x190   : > { %v970_v30 = vpack.c.bf16 %v955_v27, %v954_v26  ;;  %1282 = vrot.lane.b32.xlu0 %v1261_v28, %s2006_s14 }
 0x192   : > { %1694 = vmatprep.mubr.msk.bf16.mxu0 %vm676_vm4, %v970_v30 }
 0x193   : > { %1695 = vmatmul.mubr.msk.bf16.vlgmr.msra.gmra.mrb[16].mxu0 %vm676_vm4, %v971_v29 }
 0x1a8   : > { %v1682_v33 = vpop.f32.mrb[4].mxu0 }
 0x1a9   : > { %v944_v31 = vadd.f32 %v1682_v33, %v2454_v15  ;;  %v887_v34 = vpop.f32.mrb[5].mxu0 }
 0x1aa   : > { %v942_v36 = vadd.f32 %v2454_v15, %v887_v34  ;;  %v1683_v37 = vpop.f32.mrb[6].mxu0 }
 0x1ab   : > { %v945_v39 = vadd.f32 %v1683_v37, %v2454_v15  ;;  %v890_v50 = vpop.f32.mrb[7].mxu0  ;;  %v960_v41 = vmax.f32 %v944_v31, 0.0 }
 0x1ac   : > { %v943_v40 = vadd.f32 %v2454_v15, %v890_v50  ;;  %v958_v47 = vmax.f32 %v942_v36, 0.0 }
 0x1ad   : > { %v961_v45 = vmax.f32 %v945_v39, 0.0  ;;  %v1264_v46 = vpack.c.bf16 %v945_v39, %v944_v31  ;;  %v1323_v39 = vsel %vm1007_vm12, %v1269_v20, 0 }
 0x1ae   : > { %v959_v48 = vmax.f32 %v943_v40, 0.0  ;;  %v1263_v32 = vpack.c.bf16 %v943_v40, %v942_v36 }
 0x1af   : > { %v973_v42 = vpack.c.bf16 %v961_v45, %v960_v41  ;;  %1288 = vrot.lane.b32.xlu1 %v1264_v46, %s2006_s14 }
 0x1b0   : > { %v972_v43 = vpack.c.bf16 %v959_v48, %v958_v47  ;;  %1286 = vrot.lane.b32.xlu0 %v1263_v32, %s2006_s14 }
 0x1b2   : > { %1698 = vmatprep.mubr.msk.bf16.mxu0 %vm676_vm4, %v972_v43 }
 0x1b3   : > { %1699 = vmatmul.mubr.msk.bf16.gmra.mrb[20].mxu0 %vm676_vm4, %v973_v42 }
 0x1c8   : > { %v1686_v44 = vpop.f32.mrb[8].mxu0 }
 0x1c9   : > { %v948_v49 = vadd.f32 %v1686_v44, %v2454_v15  ;;  %v903_v51 = vpop.f32.mrb[9].mxu0 }
 0x1ca   : > { %v946_v52 = vadd.f32 %v2454_v15, %v903_v51  ;;  %v1687_v54 = vpop.f32.mrb[10].mxu0 }
 0x1cb   : > { %v949_v55 = vadd.f32 %v1687_v54, %v2454_v15  ;;  %v906_v35 = vpop.f32.mrb[11].mxu0  ;;  %v964_v58 = vmax.f32 %v948_v49, 0.0 }
 0x1cc   : > { %v947_v56 = vadd.f32 %v2454_v15, %v906_v35  ;;  %v962_v63 = vmax.f32 %v946_v52, 0.0 }
 0x1cd   : > { %v965_v61 = vmax.f32 %v949_v55, 0.0  ;;  %v1266_v62 = vpack.c.bf16 %v949_v55, %v948_v49 }
 0x1ce   : > { %v963_v2 = vmax.f32 %v947_v56, 0.0  ;;  %v1265_v4 = vpack.c.bf16 %v947_v56, %v946_v52 }
 0x1cf   : > { %v975_v0 = vpack.c.bf16 %v965_v61, %v964_v58  ;;  %1292 = vrot.lane.b32.xlu1 %v1266_v62, %s2006_s14 }
 0x1d0   : > { %v974_v5 = vpack.c.bf16 %v963_v2, %v962_v63  ;;  %1290 = vrot.lane.b32.xlu0 %v1265_v4, %s2006_s14 }
 0x1d2   : > { %1702 = vmatprep.mubr.msk.bf16.mxu0 %vm676_vm4, %v974_v5 }
 0x1d3   : > { %1703 = vmatmul.mubr.msk.bf16.gmra.mrb[24].mxu0 %vm676_vm4, %v975_v0 }
 0x1e5   : > { %v1690_v38 = vpop.f32.mrb[12].mxu0 }
 0x1e6   : > { %v952_v53 = vadd.f32 %v1690_v38, %v2454_v15  ;;  %v919_v6 = vpop.f32.mrb[13].mxu0 }
 0x1e7   : > { %v950_v7 = vadd.f32 %v2454_v15, %v919_v6  ;;  %v1691_v57 = vpop.f32.mrb[14].mxu0 }
 0x1e8   : > { %v953_v8 = vadd.f32 %v1691_v57, %v2454_v15  ;;  %v922_v22 = vpop.f32.mrb[15].mxu0  ;;  %v968_v10 = vmax.f32 %v952_v53, 0.0 }
 0x1e9   : > { %v951_v9 = vadd.f32 %v2454_v15, %v922_v22  ;;  %v966_v59 = vmax.f32 %v950_v7, 0.0  ;;  %v1162_v15 = vsel %vm833_vm2, %v1132_v19, 0 }
 0x1ea   : > { %v969_v11 = vmax.f32 %v953_v8, 0.0  ;;  %v1268_v12 = vpack.c.bf16 %v953_v8, %v952_v53  ;;  %1711 = vmatpush3.bf16.msra.mxu1 %v1162_v15 }
 0x1eb   : > { %v967_v60 = vmax.f32 %v951_v9, 0.0  ;;  %v1267_v16 = vpack.c.bf16 %v951_v9, %v950_v7  ;;  %1797 = vmatprep.subr.msk.bf16.mxu1 %vm1007_vm12, %v1269_v20 }
 0x1ec   : > { %v977_v17 = vpack.c.bf16 %v969_v11, %v968_v10  ;;  %1296 = vrot.lane.b32.xlu1 %v1268_v12, %s2006_s14 }
 0x1ed   : > { %v976_v18 = vpack.c.bf16 %v967_v60, %v966_v59  ;;  %1294 = vrot.lane.b32.xlu0 %v1267_v16, %s2006_s14  ;;  %s1628_s14 = sshll.u32 %s1483_s9, 7 }
 0x1ee   : > { %s2528_s17 = scalar_lea.hbm %s2585_s6, %s1628_s14 }
 0x1ef   : > { %1706 = vmatprep.mubr.msk.bf16.mxu0 %vm676_vm4, %v976_v18 }
 0x1f0   : > { %1707 = vmatmul.mubr.msk.bf16.gmra.mrb[28].mxu0 %vm676_vm4, %v977_v17 }
 0x201   : > { %v1285_v15 = vpop.permute.xlu1 %1284 }
 0x202   : > { %v1283_v19 = vpop.permute.xlu0 %1282 }
 0x221   : > { %v1289_v21 = vpop.permute.xlu1 %1288 }
 0x222   : > { %v1287_v20 = vpop.permute.xlu0 %1286 }
 0x266   : > { %v1696_v3 = vpop.f32.mrb[16].mxu0 }
 0x267   : > { %v1054_v24 = vadd.f32 %v1696_v3, %v982_v23  ;;  %v1045_v25 = vpop.f32.mrb[17].mxu0  ;;  %v1293_v3 = vpop.permute.xlu1 %1292 }
 0x268   : > { %v1046_v1 = vadd.f32 %v1045_v25, %v982_v23  ;;  %v1697_v26 = vpop.f32.mrb[18].mxu0 }
 0x269   : > { %v1057_v27 = vadd.f32 %v1697_v26, %v982_v23  ;;  %v1048_v28 = vpop.f32.mrb[19].mxu0  ;;  %v1110_v30 = vmax.f32 %v1054_v24, 0.0  ;;  %v1272_v26 = vsub.s32 3, %v2445_v13 }
 0x26a   : > { %v1049_v29 = vadd.f32 %v1048_v28, %v982_v23  ;;  %v1108_v31 = vmax.f32 %v1046_v1, 0.0  ;;  %v1135_v1 = vsub.s32 2, %v2445_v13 }
 0x26b   : > { %v1111_v33 = vmax.f32 %v1057_v27, 0.0  ;;  %v1297_v25 = vpop.permute.xlu1 %1296  ;;  %v1273_v28 = vrot.slane %v2451_v14, %v1272_v26 }
 0x26c   : > { %v1109_v34 = vmax.f32 %v1049_v29, 0.0  ;;  %v1136_v27 = vrot.slane %v2451_v14, %v1135_v1 }
 0x26d   : > { %v1125_v36 = vpack.c.bf16 %v1111_v33, %v1110_v30 }
 0x26e   : > { %v1124_v37 = vpack.c.bf16 %v1109_v34, %v1108_v31  ;;  %v1748_v29 = vadd.f32 %v1273_v28, %v1136_v27 }
 0x270   : > { %1712 = vmatprep.mubr.msk.bf16.mxu1 %vm659_vm3, %v1124_v37 }
 0x271   : > { %1713 = vmatmul.mubr.msk.bf16.vlgmr.msra.gmra.mrb[0].mxu1 %vm659_vm3, %v1125_v36 }
 0x272   : > { %1729 = vmatpush3.bf16.msra.mxu1 %v1323_v39 }
 0x286   : > { %v1700_v50 = vpop.f32.mrb[20].mxu0 }
 0x287   : > { %v1070_v40 = vadd.f32 %v1700_v50, %v982_v23  ;;  %v1061_v41 = vpop.f32.mrb[21].mxu0 }
 0x288   : > { %v1062_v45 = vadd.f32 %v1061_v41, %v982_v23  ;;  %v1701_v46 = vpop.f32.mrb[22].mxu0 }
 0x289   : > { %v1073_v47 = vadd.f32 %v1701_v46, %v982_v23  ;;  %v1064_v48 = vpop.f32.mrb[23].mxu0  ;;  %v1114_v42 = vmax.f32 %v1070_v40, 0.0 }
 0x28a   : > { %v1065_v32 = vadd.f32 %v1064_v48, %v982_v23  ;;  %v1112_v44 = vmax.f32 %v1062_v45, 0.0 }
 0x28b   : > { %v1115_v43 = vmax.f32 %v1073_v47, 0.0 }
 0x28c   : > { %v1113_v49 = vmax.f32 %v1065_v32, 0.0 }
 0x28d   : > { %v1127_v51 = vpack.c.bf16 %v1115_v43, %v1114_v42 }
 0x28e   : > { %v1126_v52 = vpack.c.bf16 %v1113_v49, %v1112_v44 }
 0x290   : > { %1716 = vmatprep.mubr.msk.bf16.mxu1 %vm659_vm3, %v1126_v52 }
 0x291   : > { %1717 = vmatmul.mubr.msk.bf16.gmra.mrb[4].mxu1 %vm659_vm3, %v1127_v51 }
 0x2a6   : > { %v1704_v54 = vpop.f32.mrb[24].mxu0 }
 0x2a7   : > { %v1086_v55 = vadd.f32 %v1704_v54, %v982_v23  ;;  %v1077_v35 = vpop.f32.mrb[25].mxu0 }
 0x2a8   : > { %v1078_v56 = vadd.f32 %v1077_v35, %v982_v23  ;;  %v1705_v58 = vpop.f32.mrb[26].mxu0 }
 0x2a9   : > { %v1089_v61 = vadd.f32 %v1705_v58, %v982_v23  ;;  %v1080_v62 = vpop.f32.mrb[27].mxu0  ;;  %v1118_v2 = vmax.f32 %v1086_v55, 0.0 }
 0x2aa   : > { %v1081_v63 = vadd.f32 %v1080_v62, %v982_v23  ;;  %v1116_v0 = vmax.f32 %v1078_v56, 0.0 }
 0x2ab   : > { %v1119_v4 = vmax.f32 %v1089_v61, 0.0 }
 0x2ac   : > { %v1117_v5 = vmax.f32 %v1081_v63, 0.0 }
 0x2ad   : > { %v1129_v38 = vpack.c.bf16 %v1119_v4, %v1118_v2 }
 0x2ae   : > { %v1128_v53 = vpack.c.bf16 %v1117_v5, %v1116_v0 }
 0x2b0   : > { %1720 = vmatprep.mubr.msk.bf16.mxu1 %vm659_vm3, %v1128_v53 }
 0x2b1   : > { %1721 = vmatmul.mubr.msk.bf16.gmra.mrb[8].mxu1 %vm659_vm3, %v1129_v38 }
 0x2c3   : > { %v1708_v6 = vpop.f32.mrb[28].mxu0 }
 0x2c4   : > { %v1102_v7 = vadd.f32 %v1708_v6, %v982_v23  ;;  %v1093_v57 = vpop.f32.mrb[29].mxu0 }
 0x2c5   : > { %v1094_v8 = vadd.f32 %v1093_v57, %v982_v23  ;;  %v1709_v22 = vpop.f32.mrb[30].mxu0 }
 0x2c6   : > { %v1105_v9 = vadd.f32 %v1709_v22, %v982_v23  ;;  %v1096_v10 = vpop.f32.mrb[31].mxu0  ;;  %v1122_v12 = vmax.f32 %v1102_v7, 0.0 }
 0x2c7   : > { %v1097_v11 = vadd.f32 %v1096_v10, %v982_v23  ;;  %v1120_v60 = vmax.f32 %v1094_v8, 0.0  ;;  %v1291_v23 = vpop.permute.xlu0 %1290 }
 0x2c8   : > { %v1123_v59 = vmax.f32 %v1105_v9, 0.0 }
 0x2c9   : > { %v1121_v16 = vmax.f32 %v1097_v11, 0.0 }
 0x2ca   : > { %v1131_v17 = vpack.c.bf16 %v1123_v59, %v1122_v12 }
 0x2cb   : > { %v1130_v18 = vpack.c.bf16 %v1121_v16, %v1120_v60  ;;  %v1295_v24 = vpop.permute.xlu0 %1294 }
 0x2cd   : > { %1724 = vmatprep.mubr.msk.bf16.mxu1 %vm659_vm3, %v1130_v18 }
 0x2ce   : > { %1725 = vmatmul.mubr.msk.bf16.gmra.mrb[12].mxu1 %vm659_vm3, %v1131_v17 }
 0x2cf   : > { %1730 = vmatprep.mubr.msk.bf16.mxu1 %vm676_vm4, %v1283_v19 }
 0x2d6   : > { %1731 = vmatmul.mubr.msk.bf16.vlgmr.msra.gmra.mrb[0].mxu1 %vm676_vm4, %v1285_v15 }
 0x2d7   : > { %1734 = vmatprep.mubr.msk.bf16.mxu1 %vm676_vm4, %v1287_v20 }
 0x2de   : > { %1735 = vmatmul.mubr.msk.bf16.gmra.mrb[4].mxu1 %vm676_vm4, %v1289_v21 }
 0x2df   : > { %1738 = vmatprep.mubr.msk.bf16.mxu1 %vm676_vm4, %v1291_v23 }
 0x2e6   : > { %1739 = vmatmul.mubr.msk.bf16.gmra.mrb[8].mxu1 %vm676_vm4, %v1293_v3 }
 0x2e7   : > { %1742 = vmatprep.mubr.msk.bf16.mxu1 %vm676_vm4, %v1295_v24 }
 0x2ee   : > { %1743 = vmatmul.mubr.msk.bf16.gmra.mrb[12].mxu1 %vm676_vm4, %v1297_v25 }
 0x3a9   : > { %v1732_v30 = vpop.f32.mrb[0].mxu1 }
 0x3aa   : > { %v1359_v33 = vpop.f32.mrb[1].mxu1  ;;  %v1747_v40 = vadd.f32 %v1748_v29, %v1732_v30 }
 0x3ab   : > { %v1749_v31 = vadd.f32 %v1748_v29, %v1359_v33  ;;  %v1733_v34 = vpop.f32.mrb[2].mxu1 }
 0x3ac   : > { %v1362_v36 = vpop.f32.mrb[3].mxu1  ;;  %v1751_v13 = vadd.f32 %v1748_v29, %v1733_v34 }
 0x3ad   : > { %1438 = vxpose.xlu0.b32.start [1/16] (narrow) %v1749_v31, 8  ;;  %v1753_v37 = vadd.f32 %v1748_v29, %v1362_v36 }
 0x3b1   : > { %1439 = vxpose.xlu0.b32.cont [2/16] (narrow) %v1753_v37, 8  ;;  %v1736_v39 = vpop.f32.mrb[4].mxu1 }
 0x3b2   : > { %v1375_v50 = vpop.f32.mrb[5].mxu1  ;;  %v1755_v49 = vadd.f32 %v1748_v29, %v1736_v39 }
 0x3b3   : > { %v1737_v41 = vpop.f32.mrb[6].mxu1  ;;  %v1757_v14 = vadd.f32 %v1748_v29, %v1375_v50 }
 0x3b4   : > { %v1378_v45 = vpop.f32.mrb[7].mxu1  ;;  %v1759_v54 = vadd.f32 %v1748_v29, %v1737_v41 }
 0x3b5   : > { %1440 = vxpose.xlu0.b32.cont [3/16] (narrow) %v1747_v40, 8  ;;  %v1761_v42 = vadd.f32 %v1748_v29, %v1378_v45 }
 0x3b9   : > { %1441 = vxpose.xlu0.b32.cont [4/16] (narrow) %v1751_v13, 8  ;;  %v1740_v46 = vpop.f32.mrb[8].mxu1 }
 0x3ba   : > { %v1391_v47 = vpop.f32.mrb[9].mxu1  ;;  %v1763_v56 = vadd.f32 %v1748_v29, %v1740_v46 }
 0x3bb   : > { %v1741_v48 = vpop.f32.mrb[10].mxu1  ;;  %v1765_v55 = vadd.f32 %v1748_v29, %v1391_v47 }
 0x3bc   : > { %v1394_v32 = vpop.f32.mrb[11].mxu1  ;;  %v1767_v58 = vadd.f32 %v1748_v29, %v1741_v48 }
 0x3bd   : > { %1442 = vxpose.xlu0.b32.cont [5/16] (narrow) %v1757_v14, 8  ;;  %v1769_v35 = vadd.f32 %v1748_v29, %v1394_v32 }
 0x3c1   : > { %1443 = vxpose.xlu0.b32.cont [6/16] (narrow) %v1761_v42, 8  ;;  %v1744_v43 = vpop.f32.mrb[12].mxu1 }
 0x3c2   : > { %v1407_v44 = vpop.f32.mrb[13].mxu1  ;;  %v1771_v63 = vadd.f32 %v1748_v29, %v1744_v43 }
 0x3c3   : > { %v1745_v51 = vpop.f32.mrb[14].mxu1  ;;  %v1773_v61 = vadd.f32 %v1748_v29, %v1407_v44 }
 0x3c4   : > { %v1410_v52 = vpop.f32.mrb[15].mxu1  ;;  %v1775_v2 = vadd.f32 %v1748_v29, %v1745_v51 }
 0x3c5   : > { %1444 = vxpose.xlu0.b32.cont [7/16] (narrow) %v1755_v49, 8  ;;  %v1777_v62 = vadd.f32 %v1748_v29, %v1410_v52 }
 0x3c9   : > { %1445 = vxpose.xlu0.b32.cont [8/16] (narrow) %v1759_v54, 8 }
 0x3cd   : > { %1446 = vxpose.xlu0.b32.cont [9/16] (narrow) %v1765_v55, 8 }
 0x3d1   : > { %1447 = vxpose.xlu0.b32.cont [10/16] (narrow) %v1769_v35, 8 }
 0x3d5   : > { %1448 = vxpose.xlu0.b32.cont [11/16] (narrow) %v1763_v56, 8 }
 0x3d9   : > { %1449 = vxpose.xlu0.b32.cont [12/16] (narrow) %v1767_v58, 8 }
 0x3dd   : > { %1450 = vxpose.xlu0.b32.cont [13/16] (narrow) %v1773_v61, 8 }
 0x3e1   : > { %1451 = vxpose.xlu0.b32.cont [14/16] (narrow) %v1777_v62, 8 }
 0x3e5   : > { %1452 = vxpose.xlu0.b32.cont [15/16] (narrow) %v1771_v63, 8 }
 0x3e9   : > { %1453 = vxpose.xlu0.b32.end [16/16] (narrow) %v1775_v2, 8 }
 0x42d   : > { %v1454_v4 = vpop.trf.xlu0 }
 0x42e   : > { %1470 = vst [vmem:[%s258_s12] sm:$0xff] %v1454_v4 }
 0x42f   : > { %1915 = shalt.err (!%p1912_p6)
}
 0x430   : > { %s1916_s20 = scalar_lea.hbm %s2528_s17, 128  ;;  %s1920_s12 = scalar_lea.hbm %s2585_s6, 512 }
 0x431   : > { %p1917_p7 = scmp.ne.s32.totalorder %s2528_s17, %s1916_s20  ;;  %p1921_p11 = scmp.lt.u32.totalorder %s2528_s17, %s2585_s6 }
 0x432   : > { %p1922_p12 = scmp.lt.u32.totalorder %s1920_s12, %s1916_s20  ;;  %p1924_p0 = scmp.lt.u32.totalorder %s1916_s20, %s2528_s17 }
 0x433   : > { %p1918_p9 = pnand %p1917_p7, %p2094_p3 }
 0x434   : > { %p1923_p13 = por %p1922_p12, %p1921_p11 }
 0x435   : > { %p1919_p10 = pneg %p1918_p9 }
 0x436   : > { %p1925_p1 = por %p1924_p0, %p1923_p13 }
 0x438   : > { %p1926_p2 = pnand %p1925_p1, %p1919_p10 }
 0x43a   : > { %1929 = shalt.err (!%p1926_p2)
}
 0x43b   : > { %1799 = dma.vmem_to_hbm [thread:$0]  (%p2094_p3), %s2523_s13, 128, %s2528_s17, %s1472_s18  }
 0x43c PF: > { %p1805_p4 = scmp.ge.s32.totalorder %s1996_s28, 2  ;;  %s1499_s0 = sand.u32 1, %s1968_s21  }
 0x43d   : > { %s1500_s19 = scalar_lea.sflag [#allocation3], %s1499_s0 }
 0x43e   : > { %p1802_p5 = pnand %p1805_p4, %p2103_p8 }
 0x440   : > { %1963 = dma.done.wait (!%p1802_p5), %s1500_s19, 128  }
 0x441   : > { %1965 = vsyncadd (!%p1802_p5), %s1500_s19, 4294967168  ;;  %s19_s28 = sadd.s32 1, %s1996_s28   ;;  %s2590_s21 = smov %s1972_s22 }
 0x442   : > { %p16_p6 = scmp.ge.s32.totalorder %s19_s28, 6   ;;  %s2591_s22 = smov %s1976_s23 }
 0x443   : > { %s2592_s23 = smov %s2112_s15  ;;  %s2593_s24 = smov %s1988_s26 }
 0x444   : > { %s2594_s25 = smov %s1992_s27  ;;  %s2595_s26 = smov %s2598_s7 }
 0x445   : > { %s2596_s27 = smov %s2602_s8  ;;  %18 = sbr.rel (!%p16_p6) target bundleno = 7 (0x7), region = 80 }
 0x44c   :  { %1505 = vsyncpa [#allocation3], 1 }
 0x44d   :  { %1507 = vsyncpa [#allocation3 + $0x1], 1 }

</bundles_post_ra>
